<compile_context>
chip_gen: v7x
topology: tpu7x:2x2x1
jax: 0.10.0
libtpu: 0.0.40
codegen_flags: <defaults>
</compile_context>

<pallas_src>
import functools

import jax
import jax.numpy as jnp
from jax.experimental import pallas as pl
from jax.experimental.pallas import tpu as pltpu

# ---------------------------------------------------------------------------
# Model configuration (mirrors FlexibleTorchModel.__init__ args)
# ---------------------------------------------------------------------------
IN_DIM = 16
HIDDEN_DIMS = (32, 32)
OUT_DIMS = (8, 4)
DROP_RATE = 0.0                      # module default; p=0.0 -> identity
OUT_CLASS_YNS = (False, True)        # head0 -> ReLU, head1 -> softmax

_H0, _H1 = HIDDEN_DIMS
_O0, _O1 = OUT_DIMS
_OH = _O0 + _O1

# TODO(synk): stochastic dropout (drop_rate > 0.0) not implemented; with the
# module default drop_rate=0.0, F.dropout is the identity, which is what we do.
# TODO(synk): on v7x, for tiny batches that fit a single block, splitting into
# >=2 grid steps would engage both TensorCores; not worth it at these sizes.


def _round_up(n, m):
    return ((n + m - 1) // m) * m


def _flexible_mlp_kernel(x_ref,
                         w0t_ref, b0_ref,
                         w1t_ref, b1_ref,
                         wht_ref, bh_ref,
                         out0_ref, out1_ref):
    """Fused forward pass for one batch tile.

    Natural layout: batch on sublanes, features on lanes.
      x_ref   : (tm, IN_DIM)
      w*t_ref : (in, out)   -- pre-transposed nn.Linear weights
      b*_ref  : (1, out)
      out0    : (tm, O0)  ReLU head
      out1    : (tm, O1)  softmax head
    """
    cdt = w0t_ref.dtype

    # Hidden layer 0: (tm, IN) @ (IN, H0) + (1, H0), ReLU (dropout p=0 -> id)
    h = jnp.dot(x_ref[...], w0t_ref[...],
                preferred_element_type=jnp.float32) + b0_ref[...]
    h = jnp.maximum(h, 0.0).astype(cdt)

    # Hidden layer 1: (tm, H0) @ (H0, H1) + (1, H1), ReLU
    h = jnp.dot(h, w1t_ref[...],
                preferred_element_type=jnp.float32) + b1_ref[...]
    h = jnp.maximum(h, 0.0).astype(cdt)

    # Both heads fused into a single matmul: (tm, H1) @ (H1, O0+O1) + (1, O0+O1)
    y = jnp.dot(h, wht_ref[...],
                preferred_element_type=jnp.float32) + bh_ref[...]

    # Head 0 (cols 0:O0): ReLU  (out_class_yns[0] == False)
    out0_ref[...] = jnp.maximum(y[:, :_O0], 0.0).astype(out0_ref.dtype)

    # Head 1 (cols O0:O0+O1): softmax over the class (lane) axis, exact divide.
    z = y[:, _O0:_O0 + _O1]
    z = z - jnp.max(z, axis=-1, keepdims=True)
    e = jnp.exp(z)
    out1_ref[...] = (e / jnp.sum(e, axis=-1, keepdims=True)).astype(out1_ref.dtype)


@functools.partial(jax.jit, static_argnames=("batch_tile", "compute_dtype"))
def flexible_model_forward(x, params, *, batch_tile=8192,
                           compute_dtype=jnp.float32):
    """Fused MLP forward.

    x:      (B, IN_DIM) float32
    params: dict with w0,b0,w1,b1,wl0,bl0,wl1,bl1 in PyTorch layout
            (weights (out, in), biases (out,))
    returns: (out0 (B, OUT_DIMS[0]), out1 (B, OUT_DIMS[1])) -- float32
    """
    B, in_dim = x.shape
    assert in_dim == IN_DIM
    assert batch_tile % 8 == 0

    # Tiny weight reshuffles, once per call (outside the kernel):
    # transpose to (in, out) and fuse the two head layers.
    w0t = params["w0"].T.astype(compute_dtype)                         # (IN, H0)
    b0 = params["b0"].reshape(1, _H0).astype(compute_dtype)
    w1t = params["w1"].T.astype(compute_dtype)                         # (H0, H1)
    b1 = params["b1"].reshape(1, _H1).astype(compute_dtype)
    wht = jnp.concatenate([params["wl0"], params["wl1"]],
                          axis=0).T.astype(compute_dtype)              # (H1, O0+O1)
    bh = jnp.concatenate([params["bl0"], params["bl1"]],
                         axis=0).reshape(1, _OH).astype(compute_dtype)

    xc = x.astype(compute_dtype)

    # Tile the batch along sublanes; whole (padded) batch in one block when it
    # fits, otherwise batch_tile rows per grid step.
    if B <= batch_tile:
        tm = _round_up(B, 8)
        Bp = tm
    else:
        tm = batch_tile
        Bp = _round_up(B, tm)
    if Bp != B:
        xc = jnp.pad(xc, ((0, Bp - B), (0, 0)))

    # Weights / biases are tiny -> full-array blocks, resident across the grid.
    full = lambda r, c: pl.BlockSpec((r, c), lambda i: (0, 0))

    grid_spec = pltpu.PrefetchScalarGridSpec(
        num_scalar_prefetch=0,
        grid=(Bp // tm,),
        in_specs=[
            # NOTE: could add pipeline_mode=pl.Buffered(3) here to deepen the
            # input pipeline; left at the default double-buffer for portability.
            pl.BlockSpec((tm, IN_DIM), lambda i: (i, 0)),   # x: tiled over batch
            full(IN_DIM, _H0), full(1, _H0),
            full(_H0, _H1),    full(1, _H1),
            full(_H1, _OH),    full(1, _OH),
        ],
        out_specs=[
            pl.BlockSpec((tm, _O0), lambda i: (i, 0)),
            pl.BlockSpec((tm, _O1), lambda i: (i, 0)),
        ],
    )

    itemsize = jnp.dtype(compute_dtype).itemsize
    weight_bytes = itemsize * (IN_DIM * _H0 + _H0 + _H0 * _H1 + _H1
                               + _H1 * _OH + _OH)
    cost = pl.CostEstimate(
        flops=2 * Bp * (IN_DIM * _H0 + _H0 * _H1 + _H1 * _OH),
        transcendentals=Bp * _O1,
        bytes_accessed=itemsize * Bp * IN_DIM + 4 * Bp * _OH + weight_bytes,
    )

    out0, out1 = pl.pallas_call(
        _flexible_mlp_kernel,
        grid_spec=grid_spec,
        out_shape=(
            jax.ShapeDtypeStruct((Bp, _O0), jnp.float32),
            jax.ShapeDtypeStruct((Bp, _O1), jnp.float32),
        ),
        compiler_params=pltpu.CompilerParams(
            dimension_semantics=("parallel",)),
        cost_estimate=cost,
    )(xc, w0t, b0, w1t, b1, wht, bh)

    # Drop any sublane padding; outputs are already (batch, features).
    if Bp != B:
        out0 = out0[:B]
        out1 = out1[:B]
    return out0, out1


def init_params(key):
    """Deterministic synthetic parameter init (PyTorch nn.Linear layout)."""
    ks = jax.random.split(key, 4)

    def lin(k, fan_in, fan_out):
        # uniform(-1/sqrt(fan_in), 1/sqrt(fan_in)), like PyTorch Linear default
        bound = 1.0 / jnp.sqrt(jnp.float32(fan_in))
        kw, kb = jax.random.split(k)
        w = jax.random.uniform(kw, (fan_out, fan_in), jnp.float32, -bound, bound)
        b = jax.random.uniform(kb, (fan_out,), jnp.float32, -bound, bound)
        return w, b

    w0, b0 = lin(ks[0], IN_DIM, _H0)
    w1, b1 = lin(ks[1], _H0, _H1)
    wl0, bl0 = lin(ks[2], _H1, _O0)
    wl1, bl1 = lin(ks[3], _H1, _O1)
    return dict(w0=w0, b0=b0, w1=w1, b1=b1,
                wl0=wl0, bl0=bl0, wl1=wl1, bl1=bl1)


def reference_forward(x, p):
    """Pure-JAX reference matching the PyTorch forward semantics."""
    h = jnp.maximum(x @ p["w0"].T + p["b0"], 0.0)
    h = jnp.maximum(h @ p["w1"].T + p["b1"], 0.0)
    y0 = jnp.maximum(h @ p["wl0"].T + p["bl0"], 0.0)
    y1 = jax.nn.softmax(h @ p["wl1"].T + p["bl1"], axis=-1)
    return y0, y1


if __name__ == "__main__":
    key = jax.random.PRNGKey(0)
    kx, kp = jax.random.split(key)
    params = init_params(kp)

    # --- multi-tile path: 2 grid steps of 128 batch rows (f32) ----------------
    B = 256
    x = jax.random.normal(kx, (B, IN_DIM), jnp.float32)
    out0, out1 = flexible_model_forward(x, params, batch_tile=128)
    jax.block_until_ready((out0, out1))

    ref0, ref1 = reference_forward(x, params)
    assert out0.shape == (B, OUT_DIMS[0]) and out1.shape == (B, OUT_DIMS[1])
    assert jnp.allclose(out0, ref0, atol=1e-4, rtol=1e-4)
    assert jnp.allclose(out1, ref1, atol=1e-4, rtol=1e-4)
    assert jnp.allclose(jnp.sum(out1, axis=-1), 1.0, atol=1e-4)

    # --- single-block path: whole small batch in one (sublane-padded) tile ----
    B2 = 48
    x2 = jax.random.normal(jax.random.PRNGKey(1), (B2, IN_DIM), jnp.float32)
    o0b, o1b = flexible_model_forward(x2, params)          # default batch_tile
    jax.block_until_ready((o0b, o1b))
    r0b, r1b = reference_forward(x2, params)
    assert jnp.allclose(o0b, r0b, atol=1e-4, rtol=1e-4)
    assert jnp.allclose(o1b, r1b, atol=1e-4, rtol=1e-4)
    assert jnp.allclose(jnp.sum(o1b, axis=-1), 1.0, atol=1e-4)

    # --- bf16 input/weight path (v6e/v7x HBM optimization); f32 accumulation --
    o0c, o1c = flexible_model_forward(x, params, compute_dtype=jnp.bfloat16)
    jax.block_until_ready((o0c, o1c))
    assert o0c.shape == (B, OUT_DIMS[0]) and o1c.shape == (B, OUT_DIMS[1])
    assert jnp.allclose(jnp.sum(o1c, axis=-1), 1.0, atol=1e-3)
    assert jnp.allclose(o0c, ref0, atol=1e-1, rtol=1e-1)

    print("KERNEL_OK")
</pallas_src>

<mosaic_0001>
module attributes {stable_mosaic.version = 11 : i64} {
  func.func @_flexible_mlp_kernel(%arg0: i32, %arg1: memref<128x16xf32, #tpu.memory_space<vmem>>, %arg2: memref<16x32xf32, #tpu.memory_space<vmem>>, %arg3: memref<1x32xf32, #tpu.memory_space<vmem>>, %arg4: memref<32x32xf32, #tpu.memory_space<vmem>>, %arg5: memref<1x32xf32, #tpu.memory_space<vmem>>, %arg6: memref<32x12xf32, #tpu.memory_space<vmem>>, %arg7: memref<1x12xf32, #tpu.memory_space<vmem>>, %arg8: memref<128x8xf32, #tpu.memory_space<vmem>>, %arg9: memref<128x4xf32, #tpu.memory_space<vmem>>) attributes {dimension_semantics = [#tpu.dimension_semantics<parallel>], iteration_bounds = array<i64: 2>, scalar_prefetch = 0 : i64, scratch_operands = 0 : i64, tpu.core_type = #tpu.core_type<tc>, window_params = [{transform_indices = @transform_0, window_bounds = array<i64: 128, 16>}, {pipeline_mode = #tpu.pipeline_mode<synchronous>, transform_indices = @transform_1, window_bounds = array<i64: 16, 32>}, {pipeline_mode = #tpu.pipeline_mode<synchronous>, transform_indices = @transform_2, window_bounds = array<i64: 1, 32>}, {pipeline_mode = #tpu.pipeline_mode<synchronous>, transform_indices = @transform_3, window_bounds = array<i64: 32, 32>}, {pipeline_mode = #tpu.pipeline_mode<synchronous>, transform_indices = @transform_4, window_bounds = array<i64: 1, 32>}, {pipeline_mode = #tpu.pipeline_mode<synchronous>, transform_indices = @transform_5, window_bounds = array<i64: 32, 12>}, {pipeline_mode = #tpu.pipeline_mode<synchronous>, transform_indices = @transform_6, window_bounds = array<i64: 1, 12>}, {transform_indices = @transform_7, window_bounds = array<i64: 128, 8>}, {transform_indices = @transform_8, window_bounds = array<i64: 128, 4>}]} {
    %c0 = arith.constant 0 : index
    %c0_0 = arith.constant 0 : index
    %0 = vector.load %arg1[%c0, %c0_0] : memref<128x16xf32, #tpu.memory_space<vmem>>, vector<128x16xf32>
    %c0_1 = arith.constant 0 : index
    %c0_2 = arith.constant 0 : index
    %1 = vector.load %arg2[%c0_1, %c0_2] : memref<16x32xf32, #tpu.memory_space<vmem>>, vector<16x32xf32>
    %cst = arith.constant dense<0.000000e+00> : vector<128x32xf32>
    %2 = tpu.matmul %0, %1, %cst {dimension_numbers = #tpu.dot_dimension_numbers<[1], [0], [0], [1], [0, 0, 1, 1], [], []>} : vector<128x16xf32>, vector<16x32xf32>, vector<128x32xf32> -> vector<128x32xf32>
    %c0_3 = arith.constant 0 : index
    %c0_4 = arith.constant 0 : index
    %3 = vector.load %arg3[%c0_3, %c0_4] : memref<1x32xf32, #tpu.memory_space<vmem>>, vector<1x32xf32>
    %4 = vector.broadcast %3 : vector<1x32xf32> to vector<128x32xf32>
    %5 = arith.addf %2, %4 : vector<128x32xf32>
    %cst_5 = arith.constant 0.000000e+00 : f32
    %6 = vector.broadcast %cst_5 : f32 to vector<128x32xf32>
    %7 = arith.maximumf %5, %6 : vector<128x32xf32>
    %c0_6 = arith.constant 0 : index
    %c0_7 = arith.constant 0 : index
    %8 = vector.load %arg4[%c0_6, %c0_7] : memref<32x32xf32, #tpu.memory_space<vmem>>, vector<32x32xf32>
    %cst_8 = arith.constant dense<0.000000e+00> : vector<128x32xf32>
    %9 = tpu.matmul %7, %8, %cst_8 {dimension_numbers = #tpu.dot_dimension_numbers<[1], [0], [0], [1], [0, 0, 1, 1], [], []>} : vector<128x32xf32>, vector<32x32xf32>, vector<128x32xf32> -> vector<128x32xf32>
    %c0_9 = arith.constant 0 : index
    %c0_10 = arith.constant 0 : index
    %10 = vector.load %arg5[%c0_9, %c0_10] : memref<1x32xf32, #tpu.memory_space<vmem>>, vector<1x32xf32>
    %11 = vector.broadcast %10 : vector<1x32xf32> to vector<128x32xf32>
    %12 = arith.addf %9, %11 : vector<128x32xf32>
    %cst_11 = arith.constant 0.000000e+00 : f32
    %13 = vector.broadcast %cst_11 : f32 to vector<128x32xf32>
    %14 = arith.maximumf %12, %13 : vector<128x32xf32>
    %c0_12 = arith.constant 0 : index
    %c0_13 = arith.constant 0 : index
    %15 = vector.load %arg6[%c0_12, %c0_13] : memref<32x12xf32, #tpu.memory_space<vmem>>, vector<32x12xf32>
    %cst_14 = arith.constant dense<0.000000e+00> : vector<128x12xf32>
    %16 = tpu.matmul %14, %15, %cst_14 {dimension_numbers = #tpu.dot_dimension_numbers<[1], [0], [0], [1], [0, 0, 1, 1], [], []>} : vector<128x32xf32>, vector<32x12xf32>, vector<128x12xf32> -> vector<128x12xf32>
    %c0_15 = arith.constant 0 : index
    %c0_16 = arith.constant 0 : index
    %17 = vector.load %arg7[%c0_15, %c0_16] : memref<1x12xf32, #tpu.memory_space<vmem>>, vector<1x12xf32>
    %18 = vector.broadcast %17 : vector<1x12xf32> to vector<128x12xf32>
    %19 = arith.addf %16, %18 : vector<128x12xf32>
    %20 = vector.extract_strided_slice %19 {offsets = [0, 0], sizes = [128, 8], strides = [1, 1]} : vector<128x12xf32> to vector<128x8xf32>
    %cst_17 = arith.constant 0.000000e+00 : f32
    %21 = vector.broadcast %cst_17 : f32 to vector<128x8xf32>
    %22 = arith.maximumf %20, %21 : vector<128x8xf32>
    %c0_18 = arith.constant 0 : index
    %c0_19 = arith.constant 0 : index
    %23 = vector.load %arg8[%c0_18, %c0_19] : memref<128x8xf32, #tpu.memory_space<vmem>>, vector<128x8xf32>
    tpu.vector_store %arg8[%c0_18, %c0_19], %22 {strides = array<i32>} : memref<128x8xf32, #tpu.memory_space<vmem>>, vector<128x8xf32>,
    %24 = vector.extract_strided_slice %19 {offsets = [0, 8], sizes = [128, 4], strides = [1, 1]} : vector<128x12xf32> to vector<128x4xf32>
    %cst_20 = arith.constant dense<0xFF800000> : vector<128xf32>
    %25 = vector.multi_reduction <maximumf>, %24, %cst_20 [1] : vector<128x4xf32> to vector<128xf32>
    %26 = vector.shape_cast %25 : vector<128xf32> to vector<128x1xf32>
    %27 = vector.broadcast %26 : vector<128x1xf32> to vector<128x4xf32>
    %28 = arith.subf %24, %27 : vector<128x4xf32>
    %29 = math.exp %28 : vector<128x4xf32>
    %cst_21 = arith.constant dense<0.000000e+00> : vector<128xf32>
    %30 = vector.multi_reduction <add>, %29, %cst_21 [1] : vector<128x4xf32> to vector<128xf32>
    %31 = vector.shape_cast %30 : vector<128xf32> to vector<128x1xf32>
    %32 = vector.broadcast %31 : vector<128x1xf32> to vector<128x4xf32>
    %33 = arith.divf %29, %32 : vector<128x4xf32>
    %c0_22 = arith.constant 0 : index
    %c0_23 = arith.constant 0 : index
    %34 = vector.load %arg9[%c0_22, %c0_23] : memref<128x4xf32, #tpu.memory_space<vmem>>, vector<128x4xf32>
    tpu.vector_store %arg9[%c0_22, %c0_23], %33 {strides = array<i32>} : memref<128x4xf32, #tpu.memory_space<vmem>>, vector<128x4xf32>,
    return
  }
  func.func @transform_0(%arg0: i32) -> (i32, i32) {
    %c0_i32 = arith.constant 0 : i32
    %c0_i32_0 = arith.constant 0 : i32
    return %arg0, %c0_i32 : i32, i32
  }
  func.func @transform_1(%arg0: i32) -> (i32, i32) {
    %c0_i32 = arith.constant 0 : i32
    %c0_i32_0 = arith.constant 0 : i32
    %c0_i32_1 = arith.constant 0 : i32
    return %c0_i32, %c0_i32_0 : i32, i32
  }
  func.func @transform_2(%arg0: i32) -> (i32, i32) {
    %c0_i32 = arith.constant 0 : i32
    %c0_i32_0 = arith.constant 0 : i32
    %c0_i32_1 = arith.constant 0 : i32
    return %c0_i32, %c0_i32_0 : i32, i32
  }
  func.func @transform_3(%arg0: i32) -> (i32, i32) {
    %c0_i32 = arith.constant 0 : i32
    %c0_i32_0 = arith.constant 0 : i32
    %c0_i32_1 = arith.constant 0 : i32
    return %c0_i32, %c0_i32_0 : i32, i32
  }
  func.func @transform_4(%arg0: i32) -> (i32, i32) {
    %c0_i32 = arith.constant 0 : i32
    %c0_i32_0 = arith.constant 0 : i32
    %c0_i32_1 = arith.constant 0 : i32
    return %c0_i32, %c0_i32_0 : i32, i32
  }
  func.func @transform_5(%arg0: i32) -> (i32, i32) {
    %c0_i32 = arith.constant 0 : i32
    %c0_i32_0 = arith.constant 0 : i32
    %c0_i32_1 = arith.constant 0 : i32
    return %c0_i32, %c0_i32_0 : i32, i32
  }
  func.func @transform_6(%arg0: i32) -> (i32, i32) {
    %c0_i32 = arith.constant 0 : i32
    %c0_i32_0 = arith.constant 0 : i32
    %c0_i32_1 = arith.constant 0 : i32
    return %c0_i32, %c0_i32_0 : i32, i32
  }
  func.func @transform_7(%arg0: i32) -> (i32, i32) {
    %c0_i32 = arith.constant 0 : i32
    %c0_i32_0 = arith.constant 0 : i32
    return %arg0, %c0_i32 : i32, i32
  }
  func.func @transform_8(%arg0: i32) -> (i32, i32) {
    %c0_i32 = arith.constant 0 : i32
    %c0_i32_0 = arith.constant 0 : i32
    return %arg0, %c0_i32 : i32, i32
  }
}

</mosaic_0001>

<bundles_post_ra>
// kernel: flexible_model_forward.1
= control target key start
LH: loop header
LB: loop body
LE: loop exit
PB: predicated region body
PF: predicated region fallthrough
CT: control target
= control target key end

     0   :  { %s1791_s27 = smov 0   ;;  %s2215_s0 = inlined_call_operand.vmem [shape: f32[256,16], index: 0, kind: input, shape index: {}]   ;;  %s2216_s1 = inlined_call_operand.vmem [shape: f32[16,32], index: 1, kind: input, shape index: {}]   ;;  %s2217_s2 = inlined_call_operand.vmem [shape: f32[1,32], index: 2, kind: input, shape index: {}]   ;;  %s2218_s3 = inlined_call_operand.vmem [shape: f32[32,32], index: 3, kind: input, shape index: {}]   ;;  %s2219_s4 = inlined_call_operand.vmem [shape: f32[1,32], index: 4, kind: input, shape index: {}]   ;;  %s2220_s5 = inlined_call_operand.vmem [shape: f32[32,12], index: 5, kind: input, shape index: {}]   ;;  %s2221_s6 = inlined_call_operand.vmem [shape: f32[1,12], index: 6, kind: input, shape index: {}]   ;;  %s2222_s7 = inlined_call_operand.vmem [shape: f32[256,8], index: 7, kind: output, shape index: {0}]   ;;  %s2223_s8 = inlined_call_operand.vmem [shape: f32[256,4], index: 8, kind: output, shape index: {1}]  }
   0x1 LB: > { %s1428_s28 = sadd.s32 4294967295, %s1743_s27   ;;  %p1432_p0 = scmp.ge.s32.totalorder %s1743_s27, 1  ;;  %s1743_s27 = sphi %s1791_s27, %s19_s27  }
   0x2   : > { %p266_p1 = scmp.lt.s32.totalorder %s1743_s27, 3 }
   0x4   : > { %p267_p2 = pnand %p1432_p0, %p266_p1 }
   0x5   : > { %v339_v0 = vld [vmem:[%s2216_s1] sm:$0xff] (!%p267_p2)  ;;  %v340_v1 = vld [vmem:[%s2216_s1 + $0x8] sm:$0xff] (!%p267_p2)  ;;  %s1433_s11 = sshll.u32 (!%p267_p2), %s1428_s28, 4  ;;  %vm348_vm0 = vcmask (!%p267_p2), 130048   ;;  %v560_v6 = vld [vmem:[%s2218_s3 + $0x10] sm:$0xff] (!%p267_p2)  ;;  %vm569_vm1 = vcmask (!%p267_p2), 261120  }
   0x6   : > { %270 = sbr.rel (%p267_p2) target bundleno = 1250 (0x4e2), region = 48  ;;  %v558_v2 = vld [vmem:[%s2218_s3] sm:$0xff] (!%p267_p2)  ;;  %v1642_v3 = vpack.c.bf16 (!%p267_p2), %v340_v1, %v339_v0  ;;  %p306_p3 = scmp.lt.s32.totalorder (!%p267_p2), %s1433_s11, 31  ;;  %v559_v4 = vld [vmem:[%s2218_s3 + $0x8] sm:$0xff] (!%p267_p2)  ;;  %v561_v7 = vld [vmem:[%s2218_s3 + $0x18] sm:$0xff] (!%p267_p2)  ;;  %vm1016_vm2 = vcmask (!%p267_p2), 97344  }
   0x7   : > { %v1646_v5 = vpack.c.bf16 (!%p267_p2), %v559_v4, %v558_v2  ;;  %v1650_v12 = vpack.c.bf16 (!%p267_p2), %v561_v7, %v560_v6  ;;  %v779_v25 = vld [vmem:[%s2220_s5] sm:$0xff] (!%p267_p2)  ;;  %v780_v26 = vld [vmem:[%s2220_s5 + $0x8] sm:$0xff] (!%p267_p2)  ;;  %v781_v27 = vld [vmem:[%s2220_s5 + $0x10] sm:$0xff] (!%p267_p2)  ;;  %vm999_vm3 = vcmask (!%p267_p2), 64512   ;;  %s1745_s21 = smov (!%p267_p2), 120   ;;  %vm1177_vm4 = vcmask (!%p267_p2), 31744  }
   0x8   : > { %1643 = vmatprep.subr.bf16.mxu0 (!%p267_p2), %v1642_v3  ;;  %1662 = vmatprep.subr.bf16.mxu1 (!%p267_p2), %v1642_v3  ;;  %v1654_v28 = vpack.c.bf16 (!%p267_p2), %v780_v26, %v779_v25  ;;  %v782_v29 = vld [vmem:[%s2220_s5 + $0x18] sm:$0xff] (!%p267_p2)  ;;  %v1439_v31 = vld [vmem:[%s2217_s2] ss:$0 sm:$0xff] (!%p267_p2) }
   0x9   : > { %1645 = vmatpush3.bf16.msra.mxu0 (!%p267_p2), %v1642_v3  ;;  %1663 = vmatpush3.bf16.msra.mxu1 (!%p267_p2), %v1642_v3  ;;  %v1658_v30 = vpack.c.bf16 (!%p267_p2), %v782_v29, %v781_v27 }
   0xa   : > { %1647 = vmatprep.subr.bf16.mxu1 (!%p267_p2), %v1646_v5  ;;  %1655 = vmatprep.subr.bf16.mxu0 (!%p267_p2), %v1654_v28 }
   0xd   : > { %s2225_s11 = smov (!%p306_p3, %s1433_s11), 31 }
   0xe   : > { %s1811_s16 = sshll.u32 %s2225_s11, 3 }
   0xf   : > { %s1817_s19 = scalar_lea.vmem %s2215_s0, %s1811_s16  ;;  %s1919_s20 = scalar_lea.vmem %s2222_s7, %s1811_s16 }
  0x10   : > { %v323_v8 = vld [vmem:[%s1817_s19] sm:$0xff]  ;;  %v324_v9 = vld [vmem:[%s1817_s19 + $0x8] sm:$0xff]  ;;  %v325_v10 = vld [vmem:[%s1817_s19 + $0x10] sm:$0xff]  ;;  %s2178_s24 = scalar_lea.vmem %s2223_s8, %s1811_s16 }
  0x11   : > { %1554 = vmatprep.mubr.msk.f32.mxu0 %vm348_vm0, %v323_v8  ;;  %v331_v11 = vld [vmem:[%s1817_s19 + $0x40] sm:$0xff]  ;;  %v326_v13 = vld [vmem:[%s1817_s19 + $0x18] sm:$0xff]  ;;  %v332_v14 = vld [vmem:[%s1817_s19 + $0x48] sm:$0xff] }
  0x12   : > { %1555 = vmatmul.mubr.msk.f32.vlgmr.msra.gmra.mrb[0].mxu0 %vm348_vm0, %v324_v9  ;;  %1566 = vmatprep.mubr.msk.f32.mxu1 %vm348_vm0, %v331_v11  ;;  %v333_v15 = vld [vmem:[%s1817_s19 + $0x50] sm:$0xff]  ;;  %v327_v16 = vld [vmem:[%s1817_s19 + $0x20] sm:$0xff]  ;;  %v334_v17 = vld [vmem:[%s1817_s19 + $0x58] sm:$0xff] }
  0x13   : > { %1557 = vmatprep.mubr.msk.f32.mxu0 %vm348_vm0, %v325_v10  ;;  %1567 = vmatmul.mubr.msk.f32.vlgmr.msra.gmra.mrb[0].mxu1 %vm348_vm0, %v332_v14  ;;  %v335_v18 = vld [vmem:[%s1817_s19 + $0x60] sm:$0xff]  ;;  %v328_v19 = vld [vmem:[%s1817_s19 + $0x28] sm:$0xff]  ;;  %v329_v20 = vld [vmem:[%s1817_s19 + $0x30] sm:$0xff] }
  0x14   : > { %1569 = vmatprep.mubr.msk.f32.mxu1 %vm348_vm0, %v333_v15  ;;  %1649 = vmatpush3.bf16.msra.mxu1 %v1646_v5  ;;  %v336_v21 = vld [vmem:[%s1817_s19 + $0x68] sm:$0xff]  ;;  %v337_v22 = vld [vmem:[%s1817_s19 + $0x70] sm:$0xff]  ;;  %v330_v23 = vld [vmem:[%s1817_s19 + $0x38] sm:$0xff] }
  0x15   : > { %1651 = vmatprep.subr.bf16.mxu1 %v1650_v12  ;;  %v338_v24 = vld [vmem:[%s1817_s19 + $0x78] sm:$0xff]  ;;  %1657 = vmatpush3.bf16.msra.mxu0 %v1654_v28 }
  0x16   : > { %1558 = vmatmul.mubr.msk.f32.gmra.mrb[2].mxu0 %vm348_vm0, %v326_v13  ;;  %1659 = vmatprep.subr.bf16.mxu0 %v1658_v30 }
  0x17   : > { %1560 = vmatprep.mubr.msk.f32.mxu0 %vm348_vm0, %v327_v16  ;;  %1570 = vmatmul.mubr.msk.f32.gmra.mrb[2].mxu1 %vm348_vm0, %v334_v17  ;;  %v1456_v16 = vld [vmem:[%s2219_s4] ss:$0 sm:$0xff] }
  0x18   : > { %1572 = vmatprep.mubr.msk.f32.mxu1 %vm348_vm0, %v335_v18  ;;  %1653 = vmatpush3.bf16.msra.mxu1 %v1650_v12 }
  0x19   : > { %1661 = vmatpush3.bf16.msra.mxu0 %v1658_v30 }
  0x1a   : > { %1561 = vmatmul.mubr.msk.f32.gmra.mrb[4].mxu0 %vm348_vm0, %v328_v19 }
  0x1b   : > { %1563 = vmatprep.mubr.msk.f32.mxu0 %vm348_vm0, %v329_v20  ;;  %1573 = vmatmul.mubr.msk.f32.gmra.mrb[4].mxu1 %vm348_vm0, %v336_v21 }
  0x1c   : > { %1575 = vmatprep.mubr.msk.f32.mxu1 %vm348_vm0, %v337_v22 }
  0x1e   : > { %1564 = vmatmul.mubr.msk.f32.gmra.mrb[6].mxu0 %vm348_vm0, %v330_v23 }
  0x1f   : > { %1576 = vmatmul.mubr.msk.f32.gmra.mrb[6].mxu1 %vm348_vm0, %v338_v24 }
  0xe5   : > { %v1556_v32 = vpop.f32.mrb[0].mxu0 }
  0xe6   : > { %v469_v33 = vadd.f32 %v1556_v32, %v1439_v31  ;;  %v463_v34 = vpop.f32.mrb[1].mxu0  ;;  %v1568_v36 = vpop.f32.mrb[0].mxu1 }
  0xe7   : > { %v464_v35 = vadd.f32 %v1439_v31, %v463_v34  ;;  %v503_v37 = vpop.f32.mrb[1].mxu1  ;;  %v509_v63 = vadd.f32 %v1568_v36, %v1439_v31 }
  0xe8   : > { %v543_v40 = vmax.f32 %v469_v33, 0.0  ;;  %v504_v57 = vadd.f32 %v1439_v31, %v503_v37 }
  0xe9   : > { %v542_v38 = vmax.f32 %v464_v35, 0.0  ;;  %v1559_v39 = vpop.f32.mrb[2].mxu0  ;;  %v551_v4 = vmax.f32 %v509_v63, 0.0 }
  0xea   : > { %v479_v41 = vadd.f32 %v1559_v39, %v1439_v31  ;;  %v473_v42 = vpop.f32.mrb[3].mxu0  ;;  %v1571_v44 = vpop.f32.mrb[2].mxu1  ;;  %v550_v2 = vmax.f32 %v504_v57, 0.0 }
  0xeb   : > { %v474_v43 = vadd.f32 %v1439_v31, %v473_v42  ;;  %1586 = vmatprep.mubr.msk.f32.mxu1 %vm569_vm1, %v542_v38  ;;  %v513_v46 = vpop.f32.mrb[3].mxu1  ;;  %v519_v5 = vadd.f32 %v1571_v44, %v1439_v31 }
  0xec   : > { %v545_v45 = vmax.f32 %v479_v41, 0.0  ;;  %1587 = vmatmul.mubr.msk.f32.vlgmr.msra.gmra.mrb[8].mxu1 %vm569_vm1, %v543_v40  ;;  %v514_v3 = vadd.f32 %v1439_v31, %v513_v46 }
  0xed   : > { %v544_v47 = vmax.f32 %v474_v43, 0.0  ;;  %v1562_v48 = vpop.f32.mrb[4].mxu0  ;;  %v553_v8 = vmax.f32 %v519_v5, 0.0 }
  0xee   : > { %v489_v49 = vadd.f32 %v1562_v48, %v1439_v31  ;;  %v483_v50 = vpop.f32.mrb[5].mxu0  ;;  %v1574_v52 = vpop.f32.mrb[4].mxu1  ;;  %v552_v6 = vmax.f32 %v514_v3, 0.0 }
  0xef   : > { %v484_v51 = vadd.f32 %v1439_v31, %v483_v50  ;;  %1589 = vmatprep.mubr.msk.f32.mxu1 %vm569_vm1, %v544_v47  ;;  %v523_v54 = vpop.f32.mrb[5].mxu1  ;;  %v529_v9 = vadd.f32 %v1574_v52, %v1439_v31 }
  0xf0   : > { %v547_v53 = vmax.f32 %v489_v49, 0.0  ;;  %1590 = vmatmul.mubr.msk.f32.gmra.mrb[10].mxu1 %vm569_vm1, %v545_v45  ;;  %v524_v7 = vadd.f32 %v1439_v31, %v523_v54 }
  0xf1   : > { %v546_v55 = vmax.f32 %v484_v51, 0.0  ;;  %v1565_v56 = vpop.f32.mrb[6].mxu0  ;;  %v555_v12 = vmax.f32 %v529_v9, 0.0 }
  0xf2   : > { %v499_v58 = vadd.f32 %v1565_v56, %v1439_v31  ;;  %v493_v59 = vpop.f32.mrb[7].mxu0  ;;  %v1577_v61 = vpop.f32.mrb[6].mxu1  ;;  %v554_v10 = vmax.f32 %v524_v7, 0.0 }
  0xf3   : > { %v494_v60 = vadd.f32 %v1439_v31, %v493_v59  ;;  %1592 = vmatprep.mubr.msk.f32.mxu1 %vm569_vm1, %v546_v55  ;;  %v533_v0 = vpop.f32.mrb[7].mxu1  ;;  %v539_v13 = vadd.f32 %v1577_v61, %v1439_v31 }
  0xf4   : > { %v549_v62 = vmax.f32 %v499_v58, 0.0  ;;  %1593 = vmatmul.mubr.msk.f32.gmra.mrb[12].mxu1 %vm569_vm1, %v547_v53  ;;  %v534_v11 = vadd.f32 %v1439_v31, %v533_v0 }
  0xf5   : > { %v548_v1 = vmax.f32 %v494_v60, 0.0  ;;  %v557_v15 = vmax.f32 %v539_v13, 0.0 }
  0xf6   : > { %v556_v14 = vmax.f32 %v534_v11, 0.0 }
  0xf7   : > { %1595 = vmatprep.mubr.msk.f32.mxu1 %vm569_vm1, %v548_v1  ;;  %v1910_v1 = vld [vmem:[%s2221_s6] ss:$0 sm:$0xff] }
  0xf8   : > { %1596 = vmatmul.mubr.msk.f32.gmra.mrb[14].mxu1 %vm569_vm1, %v549_v62 }
  0xf9   : > { %1598 = vmatprep.mubr.msk.f32.mxu1 %vm569_vm1, %v550_v2 }
  0xfc   : > { %1599 = vmatmul.mubr.msk.f32.gmra.mrb[16].mxu1 %vm569_vm1, %v551_v4 }
  0xfd   : > { %1601 = vmatprep.mubr.msk.f32.mxu1 %vm569_vm1, %v552_v6 }
 0x100   : > { %1602 = vmatmul.mubr.msk.f32.gmra.mrb[18].mxu1 %vm569_vm1, %v553_v8 }
 0x101   : > { %1604 = vmatprep.mubr.msk.f32.mxu1 %vm569_vm1, %v554_v10 }
 0x104   : > { %1605 = vmatmul.mubr.msk.f32.gmra.mrb[20].mxu1 %vm569_vm1, %v555_v12 }
 0x105   : > { %1607 = vmatprep.mubr.msk.f32.mxu1 %vm569_vm1, %v556_v14 }
 0x108   : > { %1608 = vmatmul.mubr.msk.f32.gmra.mrb[22].mxu1 %vm569_vm1, %v557_v15 }
 0x1bf   : > { %v1588_v17 = vpop.f32.mrb[8].mxu1 }
 0x1c0   : > { %v690_v18 = vadd.f32 %v1588_v17, %v1456_v16  ;;  %v684_v19 = vpop.f32.mrb[9].mxu1 }
 0x1c1   : > { %v685_v20 = vadd.f32 %v1456_v16, %v684_v19 }
 0x1c2   : > { %v764_v23 = vmax.f32 %v690_v18, 0.0 }
 0x1c3   : > { %v763_v21 = vmax.f32 %v685_v20, 0.0  ;;  %v1591_v22 = vpop.f32.mrb[10].mxu1 }
 0x1c4   : > { %v700_v24 = vadd.f32 %v1591_v22, %v1456_v16  ;;  %v694_v25 = vpop.f32.mrb[11].mxu1 }
 0x1c5   : > { %v695_v26 = vadd.f32 %v1456_v16, %v694_v25  ;;  %1618 = vmatprep.mubr.msk.f32.mxu0 %vm569_vm1, %v763_v21 }
 0x1c6   : > { %v766_v27 = vmax.f32 %v700_v24, 0.0  ;;  %1619 = vmatmul.mubr.msk.f32.vlgmr.msra.gmra.mrb[8].mxu0 %vm569_vm1, %v764_v23 }
 0x1c7   : > { %v765_v28 = vmax.f32 %v695_v26, 0.0  ;;  %v1594_v29 = vpop.f32.mrb[12].mxu1 }
 0x1c8   : > { %v710_v30 = vadd.f32 %v1594_v29, %v1456_v16  ;;  %v704_v31 = vpop.f32.mrb[13].mxu1 }
 0x1c9   : > { %v705_v32 = vadd.f32 %v1456_v16, %v704_v31  ;;  %1621 = vmatprep.mubr.msk.f32.mxu0 %vm569_vm1, %v765_v28 }
 0x1ca   : > { %v768_v33 = vmax.f32 %v710_v30, 0.0  ;;  %1622 = vmatmul.mubr.msk.f32.gmra.mrb[10].mxu0 %vm569_vm1, %v766_v27 }
 0x1cb   : > { %v767_v34 = vmax.f32 %v705_v32, 0.0  ;;  %v1597_v35 = vpop.f32.mrb[14].mxu1 }
 0x1cc   : > { %v720_v36 = vadd.f32 %v1597_v35, %v1456_v16  ;;  %v714_v37 = vpop.f32.mrb[15].mxu1 }
 0x1cd   : > { %v715_v38 = vadd.f32 %v1456_v16, %v714_v37  ;;  %1624 = vmatprep.mubr.msk.f32.mxu0 %vm569_vm1, %v767_v34 }
 0x1ce   : > { %v770_v39 = vmax.f32 %v720_v36, 0.0  ;;  %1625 = vmatmul.mubr.msk.f32.gmra.mrb[12].mxu0 %vm569_vm1, %v768_v33 }
 0x1cf   : > { %v769_v40 = vmax.f32 %v715_v38, 0.0  ;;  %v1600_v41 = vpop.f32.mrb[16].mxu1 }
 0x1d0   : > { %v730_v42 = vadd.f32 %v1600_v41, %v1456_v16  ;;  %v724_v43 = vpop.f32.mrb[17].mxu1 }
 0x1d1   : > { %v725_v44 = vadd.f32 %v1456_v16, %v724_v43  ;;  %1627 = vmatprep.mubr.msk.f32.mxu0 %vm569_vm1, %v769_v40 }
 0x1d2   : > { %v772_v45 = vmax.f32 %v730_v42, 0.0  ;;  %1628 = vmatmul.mubr.msk.f32.gmra.mrb[14].mxu0 %vm569_vm1, %v770_v39 }
 0x1d3   : > { %v771_v46 = vmax.f32 %v725_v44, 0.0  ;;  %v1603_v47 = vpop.f32.mrb[18].mxu1 }
 0x1d4   : > { %v740_v48 = vadd.f32 %v1603_v47, %v1456_v16  ;;  %v734_v49 = vpop.f32.mrb[19].mxu1 }
 0x1d5   : > { %v735_v50 = vadd.f32 %v1456_v16, %v734_v49  ;;  %1630 = vmatprep.mubr.msk.f32.mxu0 %vm569_vm1, %v771_v46 }
 0x1d6   : > { %v774_v51 = vmax.f32 %v740_v48, 0.0  ;;  %1631 = vmatmul.mubr.msk.f32.gmra.mrb[16].mxu0 %vm569_vm1, %v772_v45 }
 0x1d7   : > { %v773_v52 = vmax.f32 %v735_v50, 0.0  ;;  %v1606_v53 = vpop.f32.mrb[20].mxu1 }
 0x1d8   : > { %v750_v54 = vadd.f32 %v1606_v53, %v1456_v16  ;;  %v744_v55 = vpop.f32.mrb[21].mxu1 }
 0x1d9   : > { %v745_v56 = vadd.f32 %v1456_v16, %v744_v55  ;;  %1633 = vmatprep.mubr.msk.f32.mxu0 %vm569_vm1, %v773_v52 }
 0x1da   : > { %v776_v57 = vmax.f32 %v750_v54, 0.0  ;;  %1634 = vmatmul.mubr.msk.f32.gmra.mrb[18].mxu0 %vm569_vm1, %v774_v51 }
 0x1db   : > { %v775_v58 = vmax.f32 %v745_v56, 0.0  ;;  %v1609_v59 = vpop.f32.mrb[22].mxu1 }
 0x1dc   : > { %v760_v60 = vadd.f32 %v1609_v59, %v1456_v16  ;;  %v754_v61 = vpop.f32.mrb[23].mxu1 }
 0x1dd   : > { %v755_v62 = vadd.f32 %v1456_v16, %v754_v61  ;;  %1636 = vmatprep.mubr.msk.f32.mxu0 %vm569_vm1, %v775_v58 }
 0x1de   : > { %v778_v63 = vmax.f32 %v760_v60, 0.0  ;;  %1637 = vmatmul.mubr.msk.f32.gmra.mrb[20].mxu0 %vm569_vm1, %v776_v57 }
 0x1df   : > { %v777_v0 = vmax.f32 %v755_v62, 0.0 }
 0x1e1   : > { %1639 = vmatprep.mubr.msk.f32.mxu0 %vm569_vm1, %v777_v0 }
 0x1e2   : > { %1640 = vmatmul.mubr.msk.f32.gmra.mrb[22].mxu0 %vm569_vm1, %v778_v63 }
 0x299   : > { %v1620_v2 = vpop.f32.mrb[8].mxu0 }
 0x29a   : > { %v1913_v3 = vadd.f32 %v1620_v2, %v1910_v1  ;;  %v904_v4 = vpop.f32.mrb[9].mxu0 }
 0x29b   : > { %v1922_v5 = vadd.f32 %v1910_v1, %v904_v4 }
 0x29c   : > { %v984_v6 = vmax.f32 %v1913_v3, 0.0  ;;  %v1020_v7 = vsel %vm1016_vm2, %v1913_v3, -inf }
 0x29d   : > { %v983_v8 = vmax.f32 %v1922_v5, 0.0  ;;  %1021 = vmax.xlane.f32.xlu0 %v1020_v7  ;;  %v1623_v9 = vpop.f32.mrb[10].mxu0  ;;  %v1017_v15 = vsel %vm1016_vm2, %v1922_v5, -inf }
 0x29e   : > { %1001 = vst.msk [vmem:[%s1919_s20 + $0x8] sm:$0xff] %vm999_vm3, %v984_v6  ;;  %v1931_v10 = vadd.f32 %v1623_v9, %v1910_v1  ;;  %v914_v11 = vpop.f32.mrb[11].mxu0 }
 0x29f   : > { %1000 = vst.msk [vmem:[%s1919_s20] sm:$0xff] %vm999_vm3, %v983_v8  ;;  %v1936_v12 = vadd.f32 %v1910_v1, %v914_v11 }
 0x2a0   : > { %v986_v13 = vmax.f32 %v1931_v10, 0.0  ;;  %v1026_v14 = vsel %vm1016_vm2, %v1931_v10, -inf }
 0x2a1   : > { %v985_v16 = vmax.f32 %v1936_v12, 0.0  ;;  %1027 = vmax.xlane.f32.xlu1 %v1026_v14  ;;  %v1626_v17 = vpop.f32.mrb[12].mxu0  ;;  %1018 = vmax.xlane.f32.xlu0 %v1017_v15  ;;  %v1023_v22 = vsel %vm1016_vm2, %v1936_v12, -inf }
 0x2a2   : > { %1003 = vst.msk [vmem:[%s1919_s20 + $0x18] sm:$0xff] %vm999_vm3, %v986_v13  ;;  %v1947_v18 = vadd.f32 %v1626_v17, %v1910_v1  ;;  %v924_v19 = vpop.f32.mrb[13].mxu0 }
 0x2a3   : > { %1002 = vst.msk [vmem:[%s1919_s20 + $0x10] sm:$0xff] %vm999_vm3, %v985_v16  ;;  %v1952_v20 = vadd.f32 %v1910_v1, %v924_v19 }
 0x2a4   : > { %v988_v21 = vmax.f32 %v1947_v18, 0.0  ;;  %v1032_v28 = vsel %vm1016_vm2, %v1947_v18, -inf }
 0x2a5   : > { %v987_v23 = vmax.f32 %v1952_v20, 0.0  ;;  %v1629_v24 = vpop.f32.mrb[14].mxu0  ;;  %1024 = vmax.xlane.f32.xlu1 %v1023_v22  ;;  %v1029_v25 = vsel %vm1016_vm2, %v1952_v20, -inf }
 0x2a6   : > { %1005 = vst.msk [vmem:[%s1919_s20 + $0x28] sm:$0xff] %vm999_vm3, %v988_v21  ;;  %v1963_v26 = vadd.f32 %v1629_v24, %v1910_v1  ;;  %v934_v27 = vpop.f32.mrb[15].mxu0  ;;  %1030 = vmax.xlane.f32.xlu0 %v1029_v25 }
 0x2a7   : > { %1004 = vst.msk [vmem:[%s1919_s20 + $0x20] sm:$0xff] %vm999_vm3, %v987_v23  ;;  %v1970_v29 = vadd.f32 %v1910_v1, %v934_v27 }
 0x2a8   : > { %v990_v30 = vmax.f32 %v1963_v26, 0.0  ;;  %v1038_v36 = vsel %vm1016_vm2, %v1963_v26, -inf }
 0x2a9   : > { %v989_v31 = vmax.f32 %v1970_v29, 0.0  ;;  %v1632_v32 = vpop.f32.mrb[16].mxu0  ;;  %1033 = vmax.xlane.f32.xlu1 %v1032_v28  ;;  %v1035_v33 = vsel %vm1016_vm2, %v1970_v29, -inf }
 0x2aa   : > { %1007 = vst.msk [vmem:[%s1919_s20 + $0x38] sm:$0xff] %vm999_vm3, %v990_v30  ;;  %v1979_v34 = vadd.f32 %v1632_v32, %v1910_v1  ;;  %v944_v35 = vpop.f32.mrb[17].mxu0  ;;  %1036 = vmax.xlane.f32.xlu0 %v1035_v33 }
 0x2ab   : > { %1006 = vst.msk [vmem:[%s1919_s20 + $0x30] sm:$0xff] %vm999_vm3, %v989_v31  ;;  %v1986_v37 = vadd.f32 %v1910_v1, %v944_v35 }
 0x2ac   : > { %v992_v38 = vmax.f32 %v1979_v34, 0.0  ;;  %v1044_v44 = vsel %vm1016_vm2, %v1979_v34, -inf }
 0x2ad   : > { %v991_v39 = vmax.f32 %v1986_v37, 0.0  ;;  %v1635_v40 = vpop.f32.mrb[18].mxu0  ;;  %1039 = vmax.xlane.f32.xlu1 %v1038_v36  ;;  %v1041_v41 = vsel %vm1016_vm2, %v1986_v37, -inf }
 0x2ae   : > { %1009 = vst.msk [vmem:[%s1919_s20 + $0x48] sm:$0xff] %vm999_vm3, %v992_v38  ;;  %v1995_v42 = vadd.f32 %v1635_v40, %v1910_v1  ;;  %v954_v43 = vpop.f32.mrb[19].mxu0  ;;  %1042 = vmax.xlane.f32.xlu0 %v1041_v41 }
 0x2af   : > { %1008 = vst.msk [vmem:[%s1919_s20 + $0x40] sm:$0xff] %vm999_vm3, %v991_v39  ;;  %v2002_v45 = vadd.f32 %v1910_v1, %v954_v43 }
 0x2b0   : > { %v994_v46 = vmax.f32 %v1995_v42, 0.0  ;;  %v1050_v52 = vsel %vm1016_vm2, %v1995_v42, -inf }
 0x2b1   : > { %v993_v47 = vmax.f32 %v2002_v45, 0.0  ;;  %v1638_v48 = vpop.f32.mrb[20].mxu0  ;;  %1045 = vmax.xlane.f32.xlu1 %v1044_v44  ;;  %v1047_v49 = vsel %vm1016_vm2, %v2002_v45, -inf }
 0x2b2   : > { %1011 = vst.msk [vmem:[%s1919_s20 + $0x58] sm:$0xff] %vm999_vm3, %v994_v46  ;;  %v2011_v50 = vadd.f32 %v1638_v48, %v1910_v1  ;;  %v964_v51 = vpop.f32.mrb[21].mxu0  ;;  %1048 = vmax.xlane.f32.xlu0 %v1047_v49 }
 0x2b3   : > { %1010 = vst.msk [vmem:[%s1919_s20 + $0x50] sm:$0xff] %vm999_vm3, %v993_v47  ;;  %v2018_v53 = vadd.f32 %v1910_v1, %v964_v51 }
 0x2b4   : > { %v996_v54 = vmax.f32 %v2011_v50, 0.0  ;;  %v1056_v60 = vsel %vm1016_vm2, %v2011_v50, -inf }
 0x2b5   : > { %v995_v55 = vmax.f32 %v2018_v53, 0.0  ;;  %v1641_v56 = vpop.f32.mrb[22].mxu0  ;;  %1051 = vmax.xlane.f32.xlu1 %v1050_v52  ;;  %v1053_v57 = vsel %vm1016_vm2, %v2018_v53, -inf }
 0x2b6   : > { %1013 = vst.msk [vmem:[%s1919_s20 + $0x68] sm:$0xff] %vm999_vm3, %v996_v54  ;;  %v2027_v58 = vadd.f32 %v1641_v56, %v1910_v1  ;;  %v974_v59 = vpop.f32.mrb[23].mxu0  ;;  %1054 = vmax.xlane.f32.xlu0 %v1053_v57 }
 0x2b7   : > { %1012 = vst.msk [vmem:[%s1919_s20 + $0x60] sm:$0xff] %vm999_vm3, %v995_v55  ;;  %v2034_v61 = vadd.f32 %v1910_v1, %v974_v59 }
 0x2b8   : > { %v998_v62 = vmax.f32 %v2027_v58, 0.0  ;;  %v1062_v2 = vsel %vm1016_vm2, %v2027_v58, -inf }
 0x2b9   : > { %v997_v63 = vmax.f32 %v2034_v61, 0.0  ;;  %1057 = vmax.xlane.f32.xlu1 %v1056_v60  ;;  %v1059_v0 = vsel %vm1016_vm2, %v2034_v61, -inf }
 0x2ba   : > { %1015 = vst.msk [vmem:[%s1919_s20 + $0x78] sm:$0xff] %vm999_vm3, %v998_v62  ;;  %1060 = vmax.xlane.f32.xlu0 %v1059_v0 }
 0x2bb   : > { %1014 = vst.msk [vmem:[%s1919_s20 + $0x70] sm:$0xff] %vm999_vm3, %v997_v63 }
 0x2bd   : > { %1063 = vmax.xlane.f32.xlu1 %v1062_v2 }
 0x32a   : > { %v1022_v4 = vpop.xlane.xlu0 %1021 }
 0x32b   : > { %v1066_v1 = vsub.f32 %v1913_v3, %v1022_v4 }
 0x32d   : > { %v1083_v6 = vmul.f32 1.442695, %v1066_v1 }
 0x32e   : > { %v1028_v7 = vpop.xlane.xlu1 %1027  ;;  %v1019_v8 = vpop.xlane.xlu0 %1018 }
 0x32f   : > { %1673 = vpow2.f32 %v1083_v6  ;;  %v1068_v9 = vsub.f32 %v1931_v10, %v1028_v7  ;;  %v1065_v11 = vsub.f32 %v1922_v5, %v1019_v8 }
 0x331   : > { %v1087_v13 = vmul.f32 1.442695, %v1068_v9  ;;  %v1081_v14 = vmul.f32 1.442695, %v1065_v11 }
 0x332   : > { %v1025_v15 = vpop.xlane.xlu1 %1024 }
 0x333   : > { %1675 = vpow2.f32 %v1087_v13  ;;  %v1067_v16 = vsub.f32 %v1936_v12, %v1025_v15  ;;  %v1031_v17 = vpop.xlane.xlu0 %1030 }
 0x334   : > { %1677 = vpow2.f32 %v1081_v14  ;;  %v1069_v19 = vsub.f32 %v1952_v20, %v1031_v17 }
 0x335   : > { %v1085_v21 = vmul.f32 1.442695, %v1067_v16 }
 0x336   : > { %v1089_v3 = vmul.f32 1.442695, %v1069_v19  ;;  %v1034_v22 = vpop.xlane.xlu1 %1033 }
 0x337   : > { %1679 = vpow2.f32 %v1085_v21  ;;  %v1070_v23 = vsub.f32 %v1947_v18, %v1034_v22  ;;  %v1037_v24 = vpop.xlane.xlu0 %1036 }
 0x338   : > { %1681 = vpow2.f32 %v1089_v3  ;;  %v1071_v5 = vsub.f32 %v1970_v29, %v1037_v24 }
 0x339   : > { %v2053_v10 = vpop.eup %1673  ;;  %v1091_v25 = vmul.f32 1.442695, %v1070_v23 }
 0x33a   : > { %v1093_v27 = vmul.f32 1.442695, %v1071_v5  ;;  %1131 = vrot.lane.b32.xlu1 %v2053_v10, %s1745_s21  ;;  %v1040_v12 = vpop.xlane.xlu1 %1039 }
 0x33b   : > { %1683 = vpow2.f32 %v1091_v25  ;;  %v1072_v20 = vsub.f32 %v1963_v26, %v1040_v12  ;;  %v1043_v28 = vpop.xlane.xlu0 %1042 }
 0x33c   : > { %1685 = vpow2.f32 %v1093_v27  ;;  %v1073_v18 = vsub.f32 %v1986_v37, %v1043_v28 }
 0x33d   : > { %v2059_v30 = vpop.eup %1675  ;;  %v1095_v31 = vmul.f32 1.442695, %v1072_v20 }
 0x33e   : > { %v2061_v29 = vpop.eup %1677  ;;  %v1097_v32 = vmul.f32 1.442695, %v1073_v18  ;;  %1135 = vrot.lane.b32.xlu1 %v2059_v30, %s1745_s21  ;;  %v1046_v33 = vpop.xlane.xlu1 %1045 }
 0x33f   : > { %1687 = vpow2.f32 %v1095_v31  ;;  %v1074_v35 = vsub.f32 %v1979_v34, %v1046_v33  ;;  %1129 = vrot.lane.b32.xlu0 %v2061_v29, %s1745_s21  ;;  %v1049_v26 = vpop.xlane.xlu0 %1048 }
 0x340   : > { %1689 = vpow2.f32 %v1097_v32  ;;  %v1075_v36 = vsub.f32 %v2002_v45, %v1049_v26 }
 0x341   : > { %v2069_v37 = vpop.eup %1679  ;;  %v1099_v38 = vmul.f32 1.442695, %v1074_v35 }
 0x342   : > { %v2071_v39 = vpop.eup %1681  ;;  %v1101_v40 = vmul.f32 1.442695, %v1075_v36  ;;  %1133 = vrot.lane.b32.xlu1 %v2069_v37, %s1745_s21  ;;  %v1052_v41 = vpop.xlane.xlu1 %1051 }
 0x343   : > { %1691 = vpow2.f32 %v1099_v38  ;;  %v1076_v34 = vsub.f32 %v1995_v42, %v1052_v41  ;;  %1137 = vrot.lane.b32.xlu0 %v2071_v39, %s1745_s21  ;;  %v1055_v43 = vpop.xlane.xlu0 %1054 }
 0x344   : > { %1693 = vpow2.f32 %v1101_v40  ;;  %v1077_v44 = vsub.f32 %v2018_v53, %v1055_v43 }
 0x345   : > { %v2079_v45 = vpop.eup %1683  ;;  %v1103_v46 = vmul.f32 1.442695, %v1076_v34 }
 0x346   : > { %v2081_v47 = vpop.eup %1685  ;;  %v1105_v48 = vmul.f32 1.442695, %v1077_v44  ;;  %1139 = vrot.lane.b32.xlu1 %v2079_v45, %s1745_s21  ;;  %v1058_v49 = vpop.xlane.xlu1 %1057 }
 0x347   : > { %1695 = vpow2.f32 %v1103_v46  ;;  %v1078_v42 = vsub.f32 %v2011_v50, %v1058_v49  ;;  %1141 = vrot.lane.b32.xlu0 %v2081_v47, %s1745_s21  ;;  %v1061_v51 = vpop.xlane.xlu0 %1060 }
 0x348   : > { %1697 = vpow2.f32 %v1105_v48  ;;  %v1079_v52 = vsub.f32 %v2034_v61, %v1061_v51 }
 0x349   : > { %v2089_v53 = vpop.eup %1687  ;;  %v1107_v54 = vmul.f32 1.442695, %v1078_v42 }
 0x34a   : > { %v2091_v55 = vpop.eup %1689  ;;  %v1109_v56 = vmul.f32 1.442695, %v1079_v52  ;;  %1143 = vrot.lane.b32.xlu1 %v2089_v53, %s1745_s21  ;;  %v1064_v57 = vpop.xlane.xlu1 %1063 }
 0x34b   : > { %1699 = vpow2.f32 %v1107_v54  ;;  %v1080_v50 = vsub.f32 %v2027_v58, %v1064_v57  ;;  %1145 = vrot.lane.b32.xlu0 %v2091_v55, %s1745_s21 }
 0x34c   : > { %1701 = vpow2.f32 %v1109_v56 }
 0x34d   : > { %v2098_v59 = vpop.eup %1691  ;;  %v1111_v60 = vmul.f32 1.442695, %v1080_v50 }
 0x34e   : > { %v2100_v61 = vpop.eup %1693  ;;  %1147 = vrot.lane.b32.xlu1 %v2098_v59, %s1745_s21 }
 0x34f   : > { %1703 = vpow2.f32 %v1111_v60  ;;  %1149 = vrot.lane.b32.xlu0 %v2100_v61, %s1745_s21 }
 0x351   : > { %v2106_v62 = vpop.eup %1695 }
 0x352   : > { %v2108_v63 = vpop.eup %1697  ;;  %1151 = vrot.lane.b32.xlu1 %v2106_v62, %s1745_s21 }
 0x353   : > { %1153 = vrot.lane.b32.xlu0 %v2108_v63, %s1745_s21 }
 0x355   : > { %v2114_v58 = vpop.eup %1699 }
 0x356   : > { %v2116_v0 = vpop.eup %1701  ;;  %1155 = vrot.lane.b32.xlu1 %v2114_v58, %s1745_s21 }
 0x357   : > { %1157 = vrot.lane.b32.xlu0 %v2116_v0, %s1745_s21 }
 0x359   : > { %v2122_v2 = vpop.eup %1703 }
 0x35a   : > { %1159 = vrot.lane.b32.xlu1 %v2122_v2, %s1745_s21 }
 0x3ac   : > { %v1132_v4 = vpop.permute.xlu1 %1131 }
 0x3ad   : > { %v1181_v1 = vsel %vm1177_vm4, %v1132_v4, 0.0 }
 0x3ae   : > { %1182 = vadd.xlane.f32.xlu1 %v1181_v1 }
 0x3b0   : > { %v1136_v6 = vpop.permute.xlu1 %1135 }
 0x3b1   : > { %v1130_v7 = vpop.permute.xlu0 %1129  ;;  %v1187_v13 = vsel %vm1177_vm4, %v1136_v6, 0.0 }
 0x3b2   : > { %v1178_v8 = vsel %vm1177_vm4, %v1130_v7, 0.0 }
 0x3b3   : > { %1179 = vadd.xlane.f32.xlu0 %v1178_v8 }
 0x3b4   : > { %v1134_v9 = vpop.permute.xlu1 %1133 }
 0x3b5   : > { %v1138_v11 = vpop.permute.xlu0 %1137  ;;  %v1184_v17 = vsel %vm1177_vm4, %v1134_v9, 0.0 }
 0x3b6   : > { %v1190_v22 = vsel %vm1177_vm4, %v1138_v11, 0.0 }
 0x3b7   : > { %1188 = vadd.xlane.f32.xlu0 %v1187_v13 }
 0x3b8   : > { %v1140_v14 = vpop.permute.xlu1 %1139 }
 0x3b9   : > { %v1142_v15 = vpop.permute.xlu0 %1141  ;;  %v1193_v16 = vsel %vm1177_vm4, %v1140_v14, 0.0 }
 0x3ba   : > { %1194 = vadd.xlane.f32.xlu1 %v1193_v16  ;;  %v1196_v5 = vsel %vm1177_vm4, %v1142_v15, 0.0 }
 0x3bb   : > { %1185 = vadd.xlane.f32.xlu0 %v1184_v17 }
 0x3bc   : > { %v1144_v19 = vpop.permute.xlu1 %1143 }
 0x3bd   : > { %v1146_v21 = vpop.permute.xlu0 %1145  ;;  %v1199_v3 = vsel %vm1177_vm4, %v1144_v19, 0.0 }
 0x3be   : > { %1200 = vadd.xlane.f32.xlu1 %v1199_v3  ;;  %v1202_v20 = vsel %vm1177_vm4, %v1146_v21, 0.0 }
 0x3bf   : > { %1191 = vadd.xlane.f32.xlu0 %v1190_v22 }
 0x3c0   : > { %v1148_v23 = vpop.permute.xlu1 %1147 }
 0x3c1   : > { %v1205_v24 = vsel %vm1177_vm4, %v1148_v23, 0.0  ;;  %v1150_v25 = vpop.permute.xlu0 %1149 }
 0x3c2   : > { %1206 = vadd.xlane.f32.xlu1 %v1205_v24  ;;  %v1208_v32 = vsel %vm1177_vm4, %v1150_v25, 0.0 }
 0x3c3   : > { %1197 = vadd.xlane.f32.xlu0 %v1196_v5 }
 0x3c4   : > { %v1152_v27 = vpop.permute.xlu1 %1151 }
 0x3c5   : > { %v1211_v12 = vsel %vm1177_vm4, %v1152_v27, 0.0  ;;  %v1154_v18 = vpop.permute.xlu0 %1153 }
 0x3c6   : > { %1212 = vadd.xlane.f32.xlu1 %v1211_v12  ;;  %v1214_v26 = vsel %vm1177_vm4, %v1154_v18, 0.0 }
 0x3c7   : > { %1203 = vadd.xlane.f32.xlu0 %v1202_v20 }
 0x3c8   : > { %v1156_v28 = vpop.permute.xlu1 %1155 }
 0x3c9   : > { %v1217_v31 = vsel %vm1177_vm4, %v1156_v28, 0.0  ;;  %v1158_v36 = vpop.permute.xlu0 %1157 }
 0x3ca   : > { %1218 = vadd.xlane.f32.xlu1 %v1217_v31  ;;  %v1220_v38 = vsel %vm1177_vm4, %v1158_v36, 0.0 }
 0x3cb   : > { %1209 = vadd.xlane.f32.xlu0 %v1208_v32 }
 0x3cc   : > { %v1160_v33 = vpop.permute.xlu1 %1159 }
 0x3cd   : > { %v1223_v35 = vsel %vm1177_vm4, %v1160_v33, 0.0 }
 0x3ce   : > { %1224 = vadd.xlane.f32.xlu1 %v1223_v35 }
 0x3cf   : > { %1215 = vadd.xlane.f32.xlu0 %v1214_v26 }
 0x3d3   : > { %1221 = vadd.xlane.f32.xlu0 %v1220_v38 }
 0x43b   : > { %v1183_v40 = vpop.xlane.xlu1 %1182 }
 0x43c   : > { %1705 = vrcp.f32 %v1183_v40 }
 0x440   : > { %v1180_v41 = vpop.xlane.xlu0 %1179 }
 0x441   : > { %1707 = vrcp.f32 %v1180_v41 }
 0x444   : > { %v1189_v34 = vpop.xlane.xlu0 %1188 }
 0x445   : > { %1709 = vrcp.f32 %v1189_v34 }
 0x446   : > { %v1706_v43 = vpop.eup %1705 }
 0x447   : > { %v1195_v44 = vpop.xlane.xlu1 %1194  ;;  %v1229_v46 = vmul.f32 %v1706_v43, %v2053_v10 }
 0x448   : > { %v1186_v48 = vpop.xlane.xlu0 %1185 }
 0x449   : > { %1711 = vrcp.f32 %v1186_v48  ;;  %1276 = vrot.lane.b32.xlu1 %v1229_v46, %s1745_s21 }
 0x44a   : > { %1713 = vrcp.f32 %v1195_v44 }
 0x44b   : > { %v1708_v49 = vpop.eup %1707  ;;  %v1201_v42 = vpop.xlane.xlu1 %1200 }
 0x44c   : > { %v1192_v51 = vpop.xlane.xlu0 %1191  ;;  %v1227_v52 = vmul.f32 %v1708_v49, %v2061_v29 }
 0x44d   : > { %1715 = vrcp.f32 %v1192_v51 }
 0x44e   : > { %1274 = vrot.lane.b32.xlu0 %v1227_v52, %s1745_s21  ;;  %1717 = vrcp.f32 %v1201_v42 }
 0x44f   : > { %v1710_v54 = vpop.eup %1709  ;;  %v1207_v56 = vpop.xlane.xlu1 %1206 }
 0x450   : > { %v1198_v57 = vpop.xlane.xlu0 %1197  ;;  %v1233_v50 = vmul.f32 %v1710_v54, %v2059_v30 }
 0x451   : > { %1719 = vrcp.f32 %v1198_v57 }
 0x452   : > { %1280 = vrot.lane.b32.xlu1 %v1233_v50, %s1745_s21  ;;  %1721 = vrcp.f32 %v1207_v56 }
 0x453   : > { %v1712_v10 = vpop.eup %1711  ;;  %v1213_v60 = vpop.xlane.xlu1 %1212 }
 0x454   : > { %v1204_v4 = vpop.xlane.xlu0 %1203  ;;  %v1231_v1 = vmul.f32 %v1712_v10, %v2069_v37  ;;  %v1714_v6 = vpop.eup %1713 }
 0x455   : > { %1723 = vrcp.f32 %v1204_v4  ;;  %v1237_v9 = vmul.f32 %v1714_v6, %v2079_v45 }
 0x456   : > { %1278 = vrot.lane.b32.xlu1 %v1231_v1, %s1745_s21  ;;  %1725 = vrcp.f32 %v1213_v60 }
 0x457   : > { %v1716_v29 = vpop.eup %1715  ;;  %v1219_v7 = vpop.xlane.xlu1 %1218 }
 0x458   : > { %v1210_v8 = vpop.xlane.xlu0 %1209  ;;  %v1235_v30 = vmul.f32 %v1716_v29, %v2071_v39  ;;  %v1718_v11 = vpop.eup %1717 }
 0x459   : > { %1727 = vrcp.f32 %v1210_v8  ;;  %v1241_v15 = vmul.f32 %v1718_v11, %v2089_v53 }
 0x45a   : > { %1284 = vrot.lane.b32.xlu1 %v1237_v9, %s1745_s21  ;;  %1282 = vrot.lane.b32.xlu0 %v1235_v30, %s1745_s21  ;;  %1729 = vrcp.f32 %v1219_v7 }
 0x45b   : > { %v1720_v13 = vpop.eup %1719  ;;  %v1225_v37 = vpop.xlane.xlu1 %1224 }
 0x45c   : > { %v1216_v14 = vpop.xlane.xlu0 %1215  ;;  %v1239_v16 = vmul.f32 %v1720_v13, %v2081_v47  ;;  %v1722_v17 = vpop.eup %1721 }
 0x45d   : > { %1731 = vrcp.f32 %v1216_v14  ;;  %v1245_v19 = vmul.f32 %v1722_v17, %v2098_v59 }
 0x45e   : > { %1288 = vrot.lane.b32.xlu1 %v1241_v15, %s1745_s21  ;;  %1286 = vrot.lane.b32.xlu0 %v1239_v16, %s1745_s21  ;;  %1733 = vrcp.f32 %v1225_v37 }
 0x45f   : > { %v1724_v39 = vpop.eup %1723 }
 0x460   : > { %v1222_v45 = vpop.xlane.xlu0 %1221  ;;  %v1243_v21 = vmul.f32 %v1724_v39, %v2091_v55  ;;  %v1726_v3 = vpop.eup %1725 }
 0x461   : > { %1735 = vrcp.f32 %v1222_v45  ;;  %v1249_v53 = vmul.f32 %v1726_v3, %v2106_v62 }
 0x462   : > { %1292 = vrot.lane.b32.xlu1 %v1245_v19, %s1745_s21  ;;  %1290 = vrot.lane.b32.xlu0 %v1243_v21, %s1745_s21 }
 0x463   : > { %v1728_v47 = vpop.eup %1727 }
 0x464   : > { %v1247_v22 = vmul.f32 %v1728_v47, %v2100_v61  ;;  %v1730_v23 = vpop.eup %1729 }
 0x465   : > { %v1253_v55 = vmul.f32 %v1730_v23, %v2114_v58 }
 0x466   : > { %1296 = vrot.lane.b32.xlu1 %v1249_v53, %s1745_s21  ;;  %1294 = vrot.lane.b32.xlu0 %v1247_v22, %s1745_s21 }
 0x467   : > { %v1732_v59 = vpop.eup %1731 }
 0x468   : > { %v1251_v24 = vmul.f32 %v1732_v59, %v2108_v63  ;;  %v1734_v5 = vpop.eup %1733 }
 0x469   : > { %v1257_v62 = vmul.f32 %v1734_v5, %v2122_v2 }
 0x46a   : > { %1300 = vrot.lane.b32.xlu1 %v1253_v55, %s1745_s21  ;;  %1298 = vrot.lane.b32.xlu0 %v1251_v24, %s1745_s21 }
 0x46b   : > { %v1736_v25 = vpop.eup %1735 }
 0x46c   : > { %v1255_v61 = vmul.f32 %v1736_v25, %v2116_v0 }
 0x46e   : > { %1304 = vrot.lane.b32.xlu1 %v1257_v62, %s1745_s21  ;;  %1302 = vrot.lane.b32.xlu0 %v1255_v61, %s1745_s21 }
 0x4bb   : > { %v1277_v63 = vpop.permute.xlu1 %1276 }
 0x4bc   : > { %1323 = vst.msk [vmem:[%s2178_s24 + $0x8] sm:$0xff] %vm1177_vm4, %v1277_v63 }
 0x4c0   : > { %v1275_v58 = vpop.permute.xlu0 %1274 }
 0x4c1   : > { %1322 = vst.msk [vmem:[%s2178_s24] sm:$0xff] %vm1177_vm4, %v1275_v58 }
 0x4c4   : > { %v1281_v0 = vpop.permute.xlu1 %1280 }
 0x4c5   : > { %1325 = vst.msk [vmem:[%s2178_s24 + $0x18] sm:$0xff] %vm1177_vm4, %v1281_v0 }
 0x4c8   : > { %v1279_v2 = vpop.permute.xlu1 %1278 }
 0x4c9   : > { %1324 = vst.msk [vmem:[%s2178_s24 + $0x10] sm:$0xff] %vm1177_vm4, %v1279_v2 }
 0x4cc   : > { %v1285_v27 = vpop.permute.xlu1 %1284  ;;  %v1283_v12 = vpop.permute.xlu0 %1282 }
 0x4cd   : > { %1327 = vst.msk [vmem:[%s2178_s24 + $0x28] sm:$0xff] %vm1177_vm4, %v1285_v27  ;;  %1326 = vst.msk [vmem:[%s2178_s24 + $0x20] sm:$0xff] %vm1177_vm4, %v1283_v12 }
 0x4d0   : > { %v1289_v20 = vpop.permute.xlu1 %1288  ;;  %v1287_v28 = vpop.permute.xlu0 %1286 }
 0x4d1   : > { %1329 = vst.msk [vmem:[%s2178_s24 + $0x38] sm:$0xff] %vm1177_vm4, %v1289_v20  ;;  %1328 = vst.msk [vmem:[%s2178_s24 + $0x30] sm:$0xff] %vm1177_vm4, %v1287_v28 }
 0x4d4   : > { %v1293_v18 = vpop.permute.xlu1 %1292  ;;  %v1291_v31 = vpop.permute.xlu0 %1290 }
 0x4d5   : > { %1331 = vst.msk [vmem:[%s2178_s24 + $0x48] sm:$0xff] %vm1177_vm4, %v1293_v18  ;;  %1330 = vst.msk [vmem:[%s2178_s24 + $0x40] sm:$0xff] %vm1177_vm4, %v1291_v31 }
 0x4d8   : > { %v1297_v32 = vpop.permute.xlu1 %1296  ;;  %v1295_v33 = vpop.permute.xlu0 %1294 }
 0x4d9   : > { %1333 = vst.msk [vmem:[%s2178_s24 + $0x58] sm:$0xff] %vm1177_vm4, %v1297_v32  ;;  %1332 = vst.msk [vmem:[%s2178_s24 + $0x50] sm:$0xff] %vm1177_vm4, %v1295_v33 }
 0x4dc   : > { %v1301_v35 = vpop.permute.xlu1 %1300  ;;  %v1299_v26 = vpop.permute.xlu0 %1298 }
 0x4dd   : > { %1335 = vst.msk [vmem:[%s2178_s24 + $0x68] sm:$0xff] %vm1177_vm4, %v1301_v35  ;;  %1334 = vst.msk [vmem:[%s2178_s24 + $0x60] sm:$0xff] %vm1177_vm4, %v1299_v26 }
 0x4e0   : > { %v1305_v36 = vpop.permute.xlu1 %1304  ;;  %v1303_v38 = vpop.permute.xlu0 %1302 }
 0x4e1   : > { %1337 = vst.msk [vmem:[%s2178_s24 + $0x78] sm:$0xff] %vm1177_vm4, %v1305_v36  ;;  %1336 = vst.msk [vmem:[%s2178_s24 + $0x70] sm:$0xff] %vm1177_vm4, %v1303_v38 }
 0x4e2 PF: > { %s19_s27 = sadd.s32 1, %s1743_s27  }
 0x4e3   : > { %p16_p4 = scmp.ge.s32.totalorder %s19_s27, 4  }
 0x4e5   :  { %18 = sbr.rel (!%p16_p4) target bundleno = 1 (0x1), region = 90 }

</bundles_post_ra>
